<compile_context>
chip_gen: v7x
topology: tpu7x:2x2x1
jax: 0.10.0
libtpu: 0.0.40
codegen_flags: <defaults>
</compile_context>

<pallas_src>
import functools

import jax
import jax.numpy as jnp
from jax.experimental import pallas as pl
from jax.experimental.pallas import tpu as pltpu


def _round_up(x, m):
    return ((x + m - 1) // m) * m


# ---- VMEM budgets (chosen for v7x 64 MiB physical; fine on v5e/v6e). -------
_VMEM_LIMIT_BYTES = 48 * 1024 * 1024      # scoped-VMEM request (all gens)
_X_STREAM_BYTES = 16 * 1024 * 1024        # x double-buffer total
_W_RESIDENT_BYTES = 20 * 1024 * 1024      # max fully VMEM-resident bf16 weight
_W_SINGLE_BUFFER_MIN = 2 * 1024 * 1024    # single-buffer resident weight above this
_TV_HARD_CAP = 16384                      # keeps the streamed-weight fallback small
_TB_MAX = 512
L_PAD = 128                               # lane-dense label dim (do NOT raise to 256)


def bow_kernel(x_ref, w_ref, b_ref, o_ref, acc_ref, *, tv):
    """One (batch-tile, vocab-tile) step of log_softmax(x @ W + b)."""
    k = pl.program_id(1)

    @pl.when(k == 0)
    def _():
        acc_ref[...] = jnp.zeros_like(acc_ref)

    # Cast the streamed x tile to bf16 in-kernel (no wrapper-side copy pass).
    x = x_ref[...].astype(jnp.bfloat16)

    if w_ref.shape[0] == tv:
        # Weight arrives already tiled along vocab (streamed fallback, or a
        # single-vocab-tile problem).
        w = w_ref[...]
    else:
        # Weight is fully VMEM-resident (fetched once); take the k-th slice.
        start = pl.multiple_of(k * tv, 128)
        w = w_ref[pl.ds(start, tv), :]

    # bf16 x bf16 -> f32 accumulate on the MXU.
    acc_ref[...] += jnp.dot(x, w, preferred_element_type=jnp.float32)

    @pl.when(k == pl.num_programs(1) - 1)
    def _():
        # Bias add + numerically stable log_softmax once per output tile.
        # Invariant: padded weight cols are 0 and padded bias is -inf, so
        # padded logits are -inf and drop out of the log-sum-exp.
        logits = acc_ref[...] + b_ref[...]
        m = jnp.max(logits, axis=-1, keepdims=True)   # finite: real labels exist
        shifted = logits - m
        lse = jnp.log(jnp.sum(jnp.exp(shifted), axis=-1, keepdims=True))
        o_ref[...] = (shifted - lse).astype(o_ref.dtype)


def bow_classifier(bow_vec, weight_t, bias):
    """log_softmax(bow_vec @ weight_t + bias, axis=-1).

    bow_vec:  (B, V)  float32 / bfloat16 / int8 counts (counts <= 256 are exact)
    weight_t: (V, L)  float32  (transposed nn.Linear weight)
    bias:     (L,)    float32
    returns:  (B, L)  float32
    """
    B, V = bow_vec.shape
    L = weight_t.shape[1]
    assert L <= L_PAD, "num_labels > 128 would need a label-tiling grid axis"

    x_itemsize = jnp.dtype(bow_vec.dtype).itemsize

    # ---- Batch tiling: minimal padding; >=2 tiles for v7x megacore. --------
    nb = pl.cdiv(B, _TB_MAX)
    if nb == 1 and B > 256:
        nb = 2                           # let both v7x TensorCores work
    TB = _round_up(pl.cdiv(B, nb), 8)
    B_pad = nb * TB

    # ---- Vocab tiling: tiles as big as the x-stream VMEM budget allows. ----
    tv_cap = _X_STREAM_BYTES // (2 * TB * x_itemsize)
    tv_cap = max(128, min(_TV_HARD_CAP, (tv_cap // 128) * 128))
    nk = pl.cdiv(V, tv_cap)
    TV = _round_up(pl.cdiv(V, nk), 128)
    V_pad = nk * TV

    # ---- Inputs: no dtype-conversion pass over X; pad only if misaligned. --
    if (B_pad, V_pad) == (B, V):
        x = bow_vec                                    # zero-copy passthrough
    else:
        x = jnp.pad(bow_vec, ((0, B_pad - B), (0, V_pad - V)))

    w = jnp.zeros((V_pad, L_PAD), jnp.bfloat16)        # padded cols exactly 0
    w = w.at[:V, :L].set(weight_t.astype(jnp.bfloat16))
    b = jnp.full((1, L_PAD), -jnp.inf, jnp.float32)    # padded bias -> -inf
    b = b.at[0, :L].set(bias.astype(jnp.float32))

    # ---- Weight residency: fetch-once full block when it fits VMEM. --------
    w_bytes = V_pad * L_PAD * 2
    if w_bytes <= _W_RESIDENT_BYTES:
        if w_bytes > _W_SINGLE_BUFFER_MIN:
            # Fetched once -> a second buffer would only waste VMEM.
            w_spec = pl.BlockSpec((V_pad, L_PAD), lambda i, k: (0, 0),
                                  pipeline_mode=pl.Buffered(1))
        else:
            w_spec = pl.BlockSpec((V_pad, L_PAD), lambda i, k: (0, 0))
    else:
        # Huge-vocab fallback: stream the weight per vocab tile (re-read once
        # per batch tile).
        w_spec = pl.BlockSpec((TV, L_PAD), lambda i, k: (k, 0))

    grid = (B_pad // TB, V_pad // TV)    # reduction (vocab) axis last

    out = pl.pallas_call(
        functools.partial(bow_kernel, tv=TV),
        out_shape=jax.ShapeDtypeStruct((B_pad, L_PAD), jnp.float32),
        grid_spec=pltpu.PrefetchScalarGridSpec(
            num_scalar_prefetch=0,
            grid=grid,
            in_specs=[
                pl.BlockSpec((TB, TV), lambda i, k: (i, k)),    # x: streamed
                w_spec,                                         # weight
                pl.BlockSpec((1, L_PAD), lambda i, k: (0, 0)),  # bias: resident
            ],
            out_specs=pl.BlockSpec((TB, L_PAD), lambda i, k: (i, 0)),
            scratch_shapes=[pltpu.VMEM((TB, L_PAD), jnp.float32)],
        ),
        compiler_params=pltpu.CompilerParams(
            dimension_semantics=("parallel", "arbitrary"),
            vmem_limit_bytes=_VMEM_LIMIT_BYTES,
        ),
    )(x, w, b)

    return out[:B, :L]


if __name__ == "__main__":
    # Small, forward-implied shapes: batch=8 bag-of-words vectors over a
    # vocab of 512, classified into 8 labels.
    B, VOCAB, NUM_LABELS = 8, 512, 8

    key = jax.random.PRNGKey(0)
    k_x, k_w, k_b = jax.random.split(key, 3)

    # Deterministic init matching nn.Linear's U(-1/sqrt(V), 1/sqrt(V)).
    bound = 1.0 / (VOCAB ** 0.5)
    weight = jax.random.uniform(k_w, (NUM_LABELS, VOCAB), jnp.float32,
                                minval=-bound, maxval=bound)  # PyTorch (L, V)
    bias = jax.random.uniform(k_b, (NUM_LABELS,), jnp.float32,
                              minval=-bound, maxval=bound)

    # Synthetic bag-of-words counts (small ints -> exact in bf16).
    bow_vec = jax.random.randint(k_x, (B, VOCAB), 0, 4).astype(jnp.float32)

    out = bow_classifier(bow_vec, weight.T, bias)
    out = jax.block_until_ready(out)
    assert out.shape == (B, NUM_LABELS)

    # Reference #1: same bf16-cast operands, f32 math (tight tolerance).
    logits_bf16 = (bow_vec.astype(jnp.bfloat16).astype(jnp.float32)
                   @ weight.T.astype(jnp.bfloat16).astype(jnp.float32) + bias)
    ref_bf16 = jax.nn.log_softmax(logits_bf16, axis=1)
    assert jnp.allclose(out, ref_bf16, atol=1e-4, rtol=1e-4), \
        "mismatch vs bf16-operand reference"

    # Reference #2: full f32 reference (loosened tolerance for bf16 operands).
    ref_f32 = jax.nn.log_softmax(bow_vec @ weight.T + bias, axis=1)
    assert jnp.allclose(out, ref_f32, atol=5e-2, rtol=1e-2), \
        "mismatch vs f32 reference"

    print("KERNEL_OK")
</pallas_src>

<mosaic_0001>
module attributes {stable_mosaic.version = 11 : i64} {
  func.func @bow_kernel(%arg0: i32, %arg1: i32, %arg2: memref<8x512xf32, #tpu.memory_space<vmem>>, %arg3: memref<512x128xbf16, #tpu.memory_space<vmem>>, %arg4: memref<1x128xf32, #tpu.memory_space<vmem>>, %arg5: memref<8x128xf32, #tpu.memory_space<vmem>>, %arg6: memref<8x128xf32, #tpu.memory_space<vmem>>) attributes {dimension_semantics = [#tpu.dimension_semantics<parallel>, #tpu.dimension_semantics<arbitrary>], iteration_bounds = array<i64: 1, 1>, scalar_prefetch = 0 : i64, scratch_operands = 1 : i64, tpu.core_type = #tpu.core_type<tc>, window_params = [{transform_indices = @transform_0, window_bounds = array<i64: 8, 512>}, {pipeline_mode = #tpu.pipeline_mode<synchronous>, transform_indices = @transform_1, window_bounds = array<i64: 512, 128>}, {pipeline_mode = #tpu.pipeline_mode<synchronous>, transform_indices = @transform_2, window_bounds = array<i64: 1, 128>}, {transform_indices = @transform_3, window_bounds = array<i64: 8, 128>}]} {
    %c0_i32 = arith.constant 0 : i32
    %0 = arith.cmpi eq, %arg1, %c0_i32 : i32
    %1 = arith.extui %0 : i1 to i32
    %c0_i32_0 = arith.constant 0 : i32
    %2 = arith.cmpi ne, %1, %c0_i32_0 : i32
    scf.if %2 {
      %cst_10 = arith.constant 0.000000e+00 : f32
      %13 = vector.broadcast %cst_10 : f32 to vector<8x128xf32>
      %c0_11 = arith.constant 0 : index
      %c0_12 = arith.constant 0 : index
      %14 = vector.load %arg6[%c0_11, %c0_12] : memref<8x128xf32, #tpu.memory_space<vmem>>, vector<8x128xf32>
      tpu.vector_store %arg6[%c0_11, %c0_12], %13 {strides = array<i32>} : memref<8x128xf32, #tpu.memory_space<vmem>>, vector<8x128xf32>,
    } else {
    }
    %c0 = arith.constant 0 : index
    %c0_1 = arith.constant 0 : index
    %3 = vector.load %arg2[%c0, %c0_1] : memref<8x512xf32, #tpu.memory_space<vmem>>, vector<8x512xf32>
    %4 = arith.truncf %3 : vector<8x512xf32> to vector<8x512xbf16>
    %c0_2 = arith.constant 0 : index
    %c0_3 = arith.constant 0 : index
    %5 = vector.load %arg3[%c0_2, %c0_3] : memref<512x128xbf16, #tpu.memory_space<vmem>>, vector<512x128xbf16>
    %c0_4 = arith.constant 0 : index
    %c0_5 = arith.constant 0 : index
    %6 = vector.load %arg6[%c0_4, %c0_5] : memref<8x128xf32, #tpu.memory_space<vmem>>, vector<8x128xf32>
    %cst = arith.constant dense<0.000000e+00> : vector<8x128xf32>
    %7 = tpu.matmul %4, %5, %cst {dimension_numbers = #tpu.dot_dimension_numbers<[1], [0], [0], [1], [0, 0, 1, 1], [], []>} : vector<8x512xbf16>, vector<512x128xbf16>, vector<8x128xf32> -> vector<8x128xf32>
    %8 = arith.addf %6, %7 : vector<8x128xf32>
    %c0_6 = arith.constant 0 : index
    %c0_7 = arith.constant 0 : index
    %9 = vector.load %arg6[%c0_6, %c0_7] : memref<8x128xf32, #tpu.memory_space<vmem>>, vector<8x128xf32>
    tpu.vector_store %arg6[%c0_6, %c0_7], %8 {strides = array<i32>} : memref<8x128xf32, #tpu.memory_space<vmem>>, vector<8x128xf32>,
    %c0_i32_8 = arith.constant 0 : i32
    %10 = arith.cmpi eq, %arg1, %c0_i32_8 : i32
    %11 = arith.extui %10 : i1 to i32
    %c0_i32_9 = arith.constant 0 : i32
    %12 = arith.cmpi ne, %11, %c0_i32_9 : i32
    scf.if %12 {
      %c0_10 = arith.constant 0 : index
      %c0_11 = arith.constant 0 : index
      %13 = vector.load %arg6[%c0_10, %c0_11] : memref<8x128xf32, #tpu.memory_space<vmem>>, vector<8x128xf32>
      %c0_12 = arith.constant 0 : index
      %c0_13 = arith.constant 0 : index
      %14 = vector.load %arg4[%c0_12, %c0_13] : memref<1x128xf32, #tpu.memory_space<vmem>>, vector<1x128xf32>
      %15 = vector.broadcast %14 : vector<1x128xf32> to vector<8x128xf32>
      %16 = arith.addf %13, %15 : vector<8x128xf32>
      %cst_14 = arith.constant dense<0xFF800000> : vector<8xf32>
      %17 = vector.multi_reduction <maximumf>, %16, %cst_14 [1] : vector<8x128xf32> to vector<8xf32>
      %18 = vector.shape_cast %17 : vector<8xf32> to vector<8x1xf32>
      %19 = vector.broadcast %18 : vector<8x1xf32> to vector<8x128xf32>
      %20 = arith.subf %16, %19 : vector<8x128xf32>
      %21 = math.exp %20 : vector<8x128xf32>
      %cst_15 = arith.constant dense<0.000000e+00> : vector<8xf32>
      %22 = vector.multi_reduction <add>, %21, %cst_15 [1] : vector<8x128xf32> to vector<8xf32>
      %23 = vector.shape_cast %22 : vector<8xf32> to vector<8x1xf32>
      %24 = math.log %23 : vector<8x1xf32>
      %25 = vector.broadcast %24 : vector<8x1xf32> to vector<8x128xf32>
      %26 = arith.subf %20, %25 : vector<8x128xf32>
      %c0_16 = arith.constant 0 : index
      %c0_17 = arith.constant 0 : index
      %27 = vector.load %arg5[%c0_16, %c0_17] : memref<8x128xf32, #tpu.memory_space<vmem>>, vector<8x128xf32>
      tpu.vector_store %arg5[%c0_16, %c0_17], %26 {strides = array<i32>} : memref<8x128xf32, #tpu.memory_space<vmem>>, vector<8x128xf32>,
    } else {
    }
    return
  }
  func.func @transform_0(%arg0: i32, %arg1: i32) -> (i32, i32) {
    %c0_i32 = arith.constant 0 : i32
    return %arg0, %arg1 : i32, i32
  }
  func.func @transform_1(%arg0: i32, %arg1: i32) -> (i32, i32) {
    %c0_i32 = arith.constant 0 : i32
    %c0_i32_0 = arith.constant 0 : i32
    %c0_i32_1 = arith.constant 0 : i32
    return %c0_i32, %c0_i32_0 : i32, i32
  }
  func.func @transform_2(%arg0: i32, %arg1: i32) -> (i32, i32) {
    %c0_i32 = arith.constant 0 : i32
    %c0_i32_0 = arith.constant 0 : i32
    %c0_i32_1 = arith.constant 0 : i32
    return %c0_i32, %c0_i32_0 : i32, i32
  }
  func.func @transform_3(%arg0: i32, %arg1: i32) -> (i32, i32) {
    %c0_i32 = arith.constant 0 : i32
    %c0_i32_0 = arith.constant 0 : i32
    return %arg0, %c0_i32 : i32, i32
  }
}

</mosaic_0001>

<bundles_post_ra>
// kernel: tpu_custom_call.1
= control target key start
LH: loop header
LB: loop body
LE: loop exit
PB: predicated region body
PF: predicated region fallthrough
CT: control target
= control target key end

     0   :  { %8 = vsyncpa [#allocation4], 0  ;;  %s694_s0 = inlined_call_operand.hbm [shape: f32[8,512], index: 0, kind: input, shape index: {}]   ;;  %s695_s1 = inlined_call_operand.hbm [shape: bf16[512,128], index: 1, kind: input, shape index: {}]   ;;  %s696_s2 = inlined_call_operand.vmem [shape: f32[1,128], index: 2, kind: input, shape index: {}]   ;;  %s697_s3 = inlined_call_operand.hbm [shape: f32[8,128], index: 3, kind: output, shape index: {}]  }
   0x1   :  { %9 = vsyncpa [#allocation7], 0 }
   0x2   :  { %10 = vsyncpa [#allocation5], 0  ;;  %s623_s12 = smov [#allocation3]   ;;  %s624_s14 = smov [#allocation6]  }
   0x3   :  { %s17_s13 = sshll.u32 %s623_s12, 4  ;;  %s26_s15 = sshll.u32 %s624_s14, 4  ;;  %s18_s13 = int_to_ptr.vmem [resolvable:$true] %s17_s13  ;;  %s648_s15 = int_to_ptr.vmem [resolvable:$true] %s26_s15 }
   0x4   :  { %s551_s18 = scalar_lea.hbm %s694_s0, 512 }
   0x5   :  { %p552_p0 = scmp.ne.s32.totalorder %s694_s0, %s551_s18  ;;  %p555_p1 = scmp.lt.u32.totalorder %s551_s18, %s694_s0 }
   0x7   :  { %p557_p2 = pnand %p555_p1, %p552_p0 }
   0x9   :  { %560 = shalt.err (!%p557_p2)
}
   0xa   :  { %s561_s23 = scalar_lea.vmem %s18_s13, 512  ;;  %p566_p4 = scmp.lt.s32.totalorder %s18_s13, %s18_s13 }
   0xb   :  { %p562_p3 = scmp.ne.s32.totalorder %s18_s13, %s561_s23  ;;  %p567_p5 = scmp.lt.s32.totalorder %s561_s23, %s561_s23 }
   0xd   :  { %p568_p6 = por %p567_p5, %p566_p4 }
   0xf   :  { %p569_p7 = pnand %p568_p6, %p562_p3 }
  0x11   :  { %572 = shalt.err (!%p569_p7)
}
  0x12   :  { %20 = dma.hbm_to_vmem [thread:$0]  %s694_s0, 512, %s18_s13, [#allocation4]  }
  0x13   :  { %s573_s28 = scalar_lea.hbm %s695_s1, 4096 }
  0x14   :  { %p574_p8 = scmp.ne.s32.totalorder %s695_s1, %s573_s28  ;;  %p577_p9 = scmp.lt.u32.totalorder %s573_s28, %s695_s1 }
  0x16   :  { %p579_p10 = pnand %p577_p9, %p574_p8 }
  0x18   :  { %582 = shalt.err (!%p579_p10)
}
  0x19   :  { %s583_s6 = scalar_lea.vmem %s648_s15, 4096  ;;  %p588_p12 = scmp.lt.s32.totalorder %s648_s15, %s648_s15 }
  0x1a   :  { %p584_p11 = scmp.ne.s32.totalorder %s648_s15, %s583_s6  ;;  %p589_p13 = scmp.lt.s32.totalorder %s583_s6, %s583_s6 }
  0x1c   :  { %p590_p0 = por %p589_p13, %p588_p12 }
  0x1e   :  { %p591_p1 = pnand %p590_p0, %p584_p11 }
  0x20   :  { %594 = shalt.err (!%p591_p1)
}
  0x21   :  { %s625_s0 = smov 64   ;;  %s626_s7 = smov 4  }
  0x22   :  { %32 = dma.hbm_to_vmem [thread:$0]  %s695_s1, 4096, %s648_s15, [#allocation7], %s625_s0, %s625_s0, %s626_s7  }
  0x23   :  { %617 = dma.done.wait [#allocation4], 512  }
  0x24   :  { %618 = vsyncadd [#allocation4], 4294966784 }
  0x25   :  { %619 = dma.done.wait [#allocation7], 4096  }
  0x26   :  { %620 = vsyncadd [#allocation7], 4294963200  ;;  %v515_v0 = vld [vmem:[#allocation6 + $0x40] sm:$0xff]   ;;  %v519_v4 = vld [vmem:[#allocation6 + $0x48] sm:$0xff]   ;;  %s627_s11 = smov [#allocation8]  }
  0x27   :  { %v516_v1 = vld [vmem:[#allocation6 + $0xc0] sm:$0xff]   ;;  %466 = vmatprep.subr.bf16.mxu0 %v515_v0  ;;  %v520_v5 = vld [vmem:[#allocation6 + $0xc8] sm:$0xff]   ;;  %v523_v8 = vld [vmem:[#allocation6 + $0x50] sm:$0xff]   ;;  %s423_s12 = sshll.u32 %s627_s11, 4  ;;  %s424_s12 = int_to_ptr.vmem [resolvable:$true] %s423_s12 }
  0x28   :  { %v517_v2 = vld [vmem:[#allocation6] sm:$0xff]   ;;  %488 = vmatprep.subr.bf16.mxu1 %v516_v1  ;;  %v521_v6 = vld [vmem:[#allocation6 + $0x8] sm:$0xff]   ;;  %v524_v9 = vld [vmem:[#allocation6 + $0xd0] sm:$0xff]   ;;  %s595_s13 = scalar_lea.vmem %s424_s12, 128  ;;  %p600_p3 = scmp.lt.s32.totalorder %s424_s12, %s424_s12 }
  0x29   :  { %v518_v3 = vld [vmem:[#allocation6 + $0x80] sm:$0xff]   ;;  %467 = vmatpush3.bf16.msra.mxu0 %v517_v2  ;;  %v522_v7 = vld [vmem:[#allocation6 + $0x88] sm:$0xff]   ;;  %v525_v10 = vld [vmem:[#allocation6 + $0x10] sm:$0xff]   ;;  %p596_p2 = scmp.ne.s32.totalorder %s424_s12, %s595_s13  ;;  %p601_p4 = scmp.lt.s32.totalorder %s595_s13, %s595_s13 }
  0x2a   :  { %489 = vmatpush3.bf16.msra.mxu1 %v518_v3  ;;  %468 = vmatprep.subr.bf16.mxu0 %v519_v4  ;;  %v526_v11 = vld [vmem:[#allocation6 + $0x90] sm:$0xff]   ;;  %v527_v12 = vld [vmem:[#allocation6 + $0x58] sm:$0xff]   ;;  %v531_v16 = vld [vmem:[#allocation6 + $0x60] sm:$0xff]  }
  0x2b   :  { %490 = vmatprep.subr.bf16.mxu1 %v520_v5  ;;  %v528_v13 = vld [vmem:[#allocation6 + $0xd8] sm:$0xff]   ;;  %v532_v17 = vld [vmem:[#allocation6 + $0xe0] sm:$0xff]   ;;  %v535_v20 = vld [vmem:[#allocation6 + $0x68] sm:$0xff]   ;;  %p602_p5 = por %p601_p4, %p600_p3 }
  0x2c   :  { %v529_v14 = vld [vmem:[#allocation6 + $0x18] sm:$0xff]   ;;  %v533_v18 = vld [vmem:[#allocation6 + $0x20] sm:$0xff]   ;;  %v536_v21 = vld [vmem:[#allocation6 + $0xe8] sm:$0xff]  }
  0x2d   :  { %469 = vmatpush3.bf16.msra.mxu0 %v521_v6  ;;  %v530_v15 = vld [vmem:[#allocation6 + $0x98] sm:$0xff]   ;;  %v534_v19 = vld [vmem:[#allocation6 + $0xa0] sm:$0xff]   ;;  %v537_v22 = vld [vmem:[#allocation6 + $0x28] sm:$0xff]   ;;  %p603_p6 = pnand %p602_p5, %p596_p2 }
  0x2e   :  { %491 = vmatpush3.bf16.msra.mxu1 %v522_v7  ;;  %470 = vmatprep.subr.bf16.mxu0 %v523_v8  ;;  %v538_v23 = vld [vmem:[#allocation6 + $0xa8] sm:$0xff]   ;;  %v539_v24 = vld [vmem:[#allocation6 + $0x70] sm:$0xff]   ;;  %v543_v28 = vld [vmem:[#allocation6 + $0x78] sm:$0xff]  }
  0x2f   :  { %492 = vmatprep.subr.bf16.mxu1 %v524_v9  ;;  %v540_v25 = vld [vmem:[#allocation6 + $0xf0] sm:$0xff]   ;;  %v544_v29 = vld [vmem:[#allocation6 + $0xf8] sm:$0xff]   ;;  %v48_v32 = vld [vmem:[#allocation3 + $0x8] sm:$0xff] }
  0x30   :  { %v541_v26 = vld [vmem:[#allocation6 + $0x30] sm:$0xff]   ;;  %v545_v30 = vld [vmem:[#allocation6 + $0x38] sm:$0xff]   ;;  %v47_v34 = vld [vmem:[#allocation3] sm:$0xff]  ;;  %v52_v35 = vpack.c.bf16 %v48_v32, %v48_v32 }
  0x31   :  { %471 = vmatpush3.bf16.msra.mxu0 %v525_v10  ;;  %v542_v27 = vld [vmem:[#allocation6 + $0xb0] sm:$0xff]   ;;  %v546_v31 = vld [vmem:[#allocation6 + $0xb8] sm:$0xff]   ;;  %v51_v37 = vpack.c.bf16 %v47_v34, %v47_v34  ;;  %v465_v50 = vld [vmem:[%s696_s2] ss:$0 sm:$0xff] }
  0x32   :  { %493 = vmatpush3.bf16.msra.mxu1 %v526_v11  ;;  %472 = vmatprep.subr.bf16.mxu0 %v527_v12  ;;  %v50_v33 = vld [vmem:[#allocation3 + $0x18] sm:$0xff]  ;;  %v49_v38 = vld [vmem:[#allocation3 + $0x10] sm:$0xff] }
  0x33   :  { %494 = vmatprep.subr.bf16.mxu1 %v528_v13  ;;  %v54_v36 = vpack.c.bf16 %v50_v33, %v50_v33  ;;  %v53_v39 = vpack.c.bf16 %v49_v38, %v49_v38  ;;  %344 = vmatprep.mubr.bf16.mxu0 %v52_v35 }
  0x35   :  { %473 = vmatpush3.bf16.msra.mxu0 %v529_v14  ;;  %384 = vmatprep.mubr.bf16.mxu1 %v54_v36 }
  0x36   :  { %495 = vmatpush3.bf16.msra.mxu1 %v530_v15  ;;  %474 = vmatprep.subr.bf16.mxu0 %v531_v16 }
  0x37   :  { %496 = vmatprep.subr.bf16.mxu1 %v532_v17 }
  0x39   :  { %475 = vmatpush3.bf16.msra.mxu0 %v533_v18 }
  0x3a   :  { %497 = vmatpush3.bf16.msra.mxu1 %v534_v19  ;;  %476 = vmatprep.subr.bf16.mxu0 %v535_v20 }
  0x3b   :  { %498 = vmatprep.subr.bf16.mxu1 %v536_v21 }
  0x3d   :  { %477 = vmatpush3.bf16.msra.mxu0 %v537_v22 }
  0x3e   :  { %499 = vmatpush3.bf16.msra.mxu1 %v538_v23  ;;  %478 = vmatprep.subr.bf16.mxu0 %v539_v24 }
  0x3f   :  { %500 = vmatprep.subr.bf16.mxu1 %v540_v25 }
  0x41   :  { %479 = vmatpush3.bf16.msra.mxu0 %v541_v26 }
  0x42   :  { %501 = vmatpush3.bf16.msra.mxu1 %v542_v27  ;;  %480 = vmatprep.subr.bf16.mxu0 %v543_v28 }
  0x43   :  { %502 = vmatprep.subr.bf16.mxu1 %v544_v29 }
  0x45   :  { %481 = vmatpush3.bf16.msra.mxu0 %v545_v30 }
  0x46   :  { %503 = vmatpush3.bf16.msra.mxu1 %v546_v31 }
  0x48   :  { %345 = vmatmul.mubr.bf16.vlgmr.msra.gmra.mrb[0].mxu0 %v51_v37 }
  0x49   :  { %385 = vmatmul.mubr.bf16.vlgmr.msra.gmra.mrb[0].mxu1 %v53_v39 }
 0x11b   :  { %v482_v40 = vpop.f32.mrb[0].mxu0 }
 0x11c   :  { %v504_v41 = vpop.f32.mrb[0].mxu1  ;;  %v483_v42 = vpop.f32.mrb[1].mxu0 }
 0x11d   :  { %v505_v43 = vpop.f32.mrb[1].mxu1  ;;  %v484_v44 = vadd.f32 %v483_v42, %v482_v40  ;;  %v485_v46 = vpop.f32.mrb[2].mxu0 }
 0x11e   :  { %v506_v45 = vadd.f32 %v505_v43, %v504_v41  ;;  %v507_v47 = vpop.f32.mrb[2].mxu1  ;;  %v486_v48 = vpop.f32.mrb[3].mxu0 }
 0x11f   :  { %v508_v49 = vpop.f32.mrb[3].mxu1 }
 0x120   :  { %v387_v51 = vadd.f32 %v506_v45, %v484_v44 }
 0x122   :  { %v405_v52 = vadd.f32 %v465_v50, %v387_v51 }
 0x124   :  { %406 = vmax.xlane.f32.xlu0 %v405_v52 }
 0x1b1   :  { %v407_v53 = vpop.xlane.xlu0 %406 }
 0x1b2   :  { %v408_v54 = vsub.f32 %v405_v52, %v407_v53 }
 0x1b4   :  { %v409_v55 = vmul.f32 1.442695, %v408_v54 }
 0x1b6   :  { %547 = vpow2.f32 %v409_v55 }
 0x1c0   :  { %v548_v56 = vpop.eup %547 }
 0x1c1   :  { %411 = vadd.xlane.f32.xlu0 %v548_v56 }
 0x24e   :  { %v412_v57 = vpop.xlane.xlu0 %411 }
 0x24f   :  { %549 = vlog2.f32 %v412_v57 }
 0x259   :  { %v550_v58 = vpop.eup %549 }
 0x25a   :  { %v414_v59 = vmul.f32 0.6931472, %v550_v58 }
 0x25c   :  { %v415_v60 = vsub.f32 %v408_v54, %v414_v59 }
 0x25e   :  { %416 = vst [vmem:[#allocation8] sm:$0xff] %v415_v60 }
 0x25f   :  { %606 = shalt.err (!%p603_p6)
}
 0x260   :  { %s607_s15 = scalar_lea.hbm %s697_s3, 128 }
 0x261   :  { %p608_p7 = scmp.ne.s32.totalorder %s697_s3, %s607_s15  ;;  %p611_p8 = scmp.lt.u32.totalorder %s607_s15, %s697_s3 }
 0x263   :  { %p613_p9 = pnand %p611_p8, %p608_p7 }
 0x265   :  { %616 = shalt.err (!%p613_p9)
}
 0x266   :  { %426 = dma.vmem_to_hbm [thread:$0]  %s424_s12, 128, %s697_s3, [#allocation5]  }
 0x267   :  { %621 = dma.done.wait [#allocation5], 128  }
 0x268   :  { %622 = vsyncadd [#allocation5], 4294967168 }
 0x269   :  { %430 = vsyncpa [#allocation4], 1 }
 0x26a   :  { %431 = vsyncpa [#allocation7], 1 }
 0x26b   :  { %432 = vsyncpa [#allocation5], 1 }

</bundles_post_ra>
